<compile_context>
chip_gen: v6e
topology: v6e:2x2x1
jax: 0.10.0
libtpu: 0.0.40
codegen_flags: <defaults>
</compile_context>

<pallas_src>
import functools

import jax
import jax.numpy as jnp
from jax.experimental import pallas as pl
from jax.experimental.pallas import tpu as pltpu

_EXPANSION = 4
_BN_EPS = 1e-5


def _pick_tm(m):
    """Row-tile size: prefer 256-512 rows, and >=2 grid steps when possible so the
    'parallel' M axis can shard across v7x's two TensorCores."""
    for t in (512, 384, 256, 128, 64, 32, 16, 8):
        if m % t == 0 and m // t >= 2:
            return t
    return m


def _compiler_params():
    return pltpu.CompilerParams(
        dimension_semantics=("parallel",),
        vmem_limit_bytes=32 * 1024 * 1024,
    )


# ----------------------------------------------------------------------------
# Pallas kernels
# ----------------------------------------------------------------------------
def _conv1x1_bias_relu_kernel(x_ref, w_ref, b_ref, o_ref):
    """out = relu(x @ w + b); BN scale already folded into w."""
    acc = jnp.dot(x_ref[...], w_ref[...], preferred_element_type=jnp.float32)
    o_ref[...] = jnp.maximum(acc + b_ref[...], 0.0).astype(o_ref.dtype)


def _tail_downsample_kernel(p_ref, w2_ref, b2_ref, w3_ref, b3_ref,
                            xs_ref, wd_ref, bd_ref, o_ref):
    """Fused conv2 (im2col patches) + conv3 + 1x1-downsample residual + ReLU.
    Intermediate activation `h` stays in VMEM/vregs."""
    h = jnp.dot(p_ref[...], w2_ref[...], preferred_element_type=jnp.float32)
    h = jnp.maximum(h + b2_ref[...], 0.0).astype(jnp.bfloat16)
    res = jnp.dot(xs_ref[...], wd_ref[...], preferred_element_type=jnp.float32) + bd_ref[...]
    out = jnp.dot(h, w3_ref[...], preferred_element_type=jnp.float32) + b3_ref[...] + res
    o_ref[...] = jnp.maximum(out, 0.0).astype(o_ref.dtype)


def _tail_identity_kernel(p_ref, w2_ref, b2_ref, w3_ref, b3_ref, res_ref, o_ref):
    """Fused conv2 + conv3 + identity residual + ReLU."""
    h = jnp.dot(p_ref[...], w2_ref[...], preferred_element_type=jnp.float32)
    h = jnp.maximum(h + b2_ref[...], 0.0).astype(jnp.bfloat16)
    out = jnp.dot(h, w3_ref[...], preferred_element_type=jnp.float32) + b3_ref[...]
    out = out + res_ref[...].astype(jnp.float32)
    o_ref[...] = jnp.maximum(out, 0.0).astype(o_ref.dtype)


# ----------------------------------------------------------------------------
# pallas_call wrappers
# ----------------------------------------------------------------------------
def _conv1x1_bias_relu(x2d, w2d, bias_row):
    m, k = x2d.shape
    n = w2d.shape[1]
    tm = _pick_tm(m)
    cost = pl.CostEstimate(
        flops=2 * m * k * n,
        transcendentals=0,
        bytes_accessed=2 * (m * k + k * n + m * n) + 4 * n,
    )
    return pl.pallas_call(
        _conv1x1_bias_relu_kernel,
        out_shape=jax.ShapeDtypeStruct((m, n), jnp.bfloat16),
        grid=(m // tm,),
        in_specs=[
            pl.BlockSpec((tm, k), lambda i: (i, 0)),
            pl.BlockSpec((k, n), lambda i: (0, 0)),
            pl.BlockSpec((1, n), lambda i: (0, 0)),
        ],
        out_specs=pl.BlockSpec((tm, n), lambda i: (i, 0)),
        compiler_params=_compiler_params(),
        cost_estimate=cost,
    )(x2d, w2d, bias_row)


def _bottleneck_tail(patches, w2, b2, w3, b3, residual2d, wd=None, bd=None):
    m, k2 = patches.shape
    planes = w2.shape[1]
    nout = w3.shape[1]
    tm = _pick_tm(m)

    in_specs = [
        pl.BlockSpec((tm, k2), lambda i: (i, 0)),
        pl.BlockSpec((k2, planes), lambda i: (0, 0)),
        pl.BlockSpec((1, planes), lambda i: (0, 0)),
        pl.BlockSpec((planes, nout), lambda i: (0, 0)),
        pl.BlockSpec((1, nout), lambda i: (0, 0)),
    ]
    args = [patches, w2, b2, w3, b3]
    flops = 2 * m * (k2 * planes + planes * nout)
    bytes_accessed = 2 * (m * k2 + k2 * planes + planes * nout + m * nout) + 4 * (planes + nout)

    if wd is not None:
        kd = residual2d.shape[1]
        in_specs += [
            pl.BlockSpec((tm, kd), lambda i: (i, 0)),
            pl.BlockSpec((kd, nout), lambda i: (0, 0)),
            pl.BlockSpec((1, nout), lambda i: (0, 0)),
        ]
        args += [residual2d, wd, bd]
        kernel = _tail_downsample_kernel
        flops += 2 * m * kd * nout
        bytes_accessed += 2 * (m * kd + kd * nout) + 4 * nout
    else:
        in_specs.append(pl.BlockSpec((tm, nout), lambda i: (i, 0)))
        args.append(residual2d)
        kernel = _tail_identity_kernel
        bytes_accessed += 2 * m * nout

    cost = pl.CostEstimate(flops=flops, transcendentals=0, bytes_accessed=bytes_accessed)
    return pl.pallas_call(
        kernel,
        out_shape=jax.ShapeDtypeStruct((m, nout), jnp.bfloat16),
        grid=(m // tm,),
        in_specs=in_specs,
        out_specs=pl.BlockSpec((tm, nout), lambda i: (i, 0)),
        compiler_params=_compiler_params(),
        cost_estimate=cost,
    )(*args)


# ----------------------------------------------------------------------------
# Parameters (deterministic, synthetic) + BN folding / packing
# ----------------------------------------------------------------------------
def init_bottleneck_params(key, inplanes, planes, stride):
    use_downsample = (stride != 1) or (inplanes != planes * _EXPANSION)
    keys = jax.random.split(key, 4 if use_downsample else 3)

    def conv_bn(k, cin, cout, ksize):
        kw, kg, kb, km, kv = jax.random.split(k, 5)
        fan_in = cin * ksize * ksize
        w = jax.random.normal(kw, (cout, cin, ksize, ksize), jnp.float32) / jnp.sqrt(float(fan_in))
        return {
            "w": w,
            "gamma": 1.0 + 0.1 * jax.random.normal(kg, (cout,), jnp.float32),
            "beta": 0.1 * jax.random.normal(kb, (cout,), jnp.float32),
            "mean": 0.1 * jax.random.normal(km, (cout,), jnp.float32),
            "var": 1.0 + 0.1 * jnp.abs(jax.random.normal(kv, (cout,), jnp.float32)),
        }

    params = {
        "stride": stride,
        "conv1": conv_bn(keys[0], inplanes, planes, 1),
        "conv2": conv_bn(keys[1], planes, planes, 3),
        "conv3": conv_bn(keys[2], planes, planes * _EXPANSION, 1),
    }
    if use_downsample:
        params["down"] = conv_bn(keys[3], inplanes, planes * _EXPANSION, 1)
    return params


def _fold(cb):
    scale = cb["gamma"] / jnp.sqrt(cb["var"] + _BN_EPS)
    bias = cb["beta"] - cb["mean"] * scale
    return scale, bias


def _pack_matmul(cb):
    """(Cout,Cin,kh,kw) conv weight + BN -> bf16 (kh*kw*Cin, Cout) matrix with the BN
    scale folded in, plus an f32 (1, Cout) bias row."""
    scale, bias = _fold(cb)
    w = cb["w"]
    cout, cin, kh, kw = w.shape
    w2d = jnp.transpose(w, (2, 3, 1, 0)).reshape(kh * kw * cin, cout)
    w2d = (w2d * scale[None, :]).astype(jnp.bfloat16)
    return w2d, bias.reshape(1, cout).astype(jnp.float32)


def pack_bottleneck(params):
    packed = {}
    packed["w1"], packed["b1"] = _pack_matmul(params["conv1"])
    packed["w2"], packed["b2"] = _pack_matmul(params["conv2"])
    packed["w3"], packed["b3"] = _pack_matmul(params["conv3"])
    if "down" in params:
        packed["wd"], packed["bd"] = _pack_matmul(params["down"])
    return packed


# ----------------------------------------------------------------------------
# Forward pass (Pallas) and pure-JAX reference
# ----------------------------------------------------------------------------
def bottleneck_forward(packed, x_nchw, *, stride):
    s = stride
    x = jnp.transpose(x_nchw, (0, 2, 3, 1)).astype(jnp.bfloat16)  # NHWC, bf16
    n, h, w, cin = x.shape
    planes = packed["w1"].shape[1]
    cout = packed["w3"].shape[1]

    # conv1 (1x1) + BN + ReLU: channel matmul, rows tiled & pipelined.
    y1 = _conv1x1_bias_relu(x.reshape(n * h * w, cin), packed["w1"], packed["b1"])
    y1 = y1.reshape(n, h, w, planes)

    # 3x3 patch extraction (pad=1, stride=s) — plain-JAX glue, tiny at these shapes.
    # For production resolutions this should move in-kernel (tap-grid accumulation).
    ho = (h + 2 - 3) // s + 1
    wo = (w + 2 - 3) // s + 1
    y1p = jnp.pad(y1, ((0, 0), (1, 1), (1, 1), (0, 0)))
    taps = [y1p[:, i:i + s * ho:s, j:j + s * wo:s, :] for i in range(3) for j in range(3)]
    patches = jnp.concatenate(taps, axis=-1).reshape(n * ho * wo, 9 * planes)

    if "wd" in packed:
        xs = x[:, ::s, ::s, :].reshape(n * ho * wo, cin)
        out2d = _bottleneck_tail(patches, packed["w2"], packed["b2"],
                                 packed["w3"], packed["b3"], xs,
                                 wd=packed["wd"], bd=packed["bd"])
    else:
        res = x.reshape(n * h * w, cin)  # identity residual (stride==1, cin==cout)
        out2d = _bottleneck_tail(patches, packed["w2"], packed["b2"],
                                 packed["w3"], packed["b3"], res)

    out = out2d.reshape(n, ho, wo, cout).astype(jnp.float32)
    return jnp.transpose(out, (0, 3, 1, 2))  # back to NCHW


def _ref_conv_bn(x_nhwc, cb, stride, pad, relu):
    scale, bias = _fold(cb)
    w_hwio = jnp.transpose(cb["w"], (2, 3, 1, 0))
    y = jax.lax.conv_general_dilated(
        x_nhwc, w_hwio, window_strides=(stride, stride),
        padding=[(pad, pad), (pad, pad)],
        dimension_numbers=("NHWC", "HWIO", "NHWC"))
    y = y * scale + bias
    return jnp.maximum(y, 0.0) if relu else y


def bottleneck_ref(params, x_nchw):
    s = params["stride"]
    x = jnp.transpose(x_nchw, (0, 2, 3, 1)).astype(jnp.float32)
    out = _ref_conv_bn(x, params["conv1"], 1, 0, True)
    out = _ref_conv_bn(out, params["conv2"], s, 1, True)
    out = _ref_conv_bn(out, params["conv3"], 1, 0, False)
    residual = _ref_conv_bn(x, params["down"], s, 0, False) if "down" in params else x
    out = jnp.maximum(out + residual, 0.0)
    return jnp.transpose(out, (0, 3, 1, 2))


# ----------------------------------------------------------------------------
if __name__ == "__main__":
    key = jax.random.PRNGKey(0)
    kx1, kx2, kp1, kp2 = jax.random.split(key, 4)

    fwd = jax.jit(bottleneck_forward, static_argnames=("stride",))

    # 1) Bottleneck with a 1x1 downsample (stride 2, 64 -> 32*4 = 128 channels).
    x1 = jax.random.normal(kx1, (2, 64, 16, 16), jnp.float32)          # NCHW
    params1 = init_bottleneck_params(kp1, inplanes=64, planes=32, stride=2)
    out1 = jax.block_until_ready(fwd(pack_bottleneck(params1), x1, stride=2))
    ref1 = bottleneck_ref(params1, x1)
    assert out1.shape == (2, 128, 8, 8)
    assert bool(jnp.all(jnp.isfinite(out1)))
    err1 = float(jnp.max(jnp.abs(out1 - ref1)) / (jnp.max(jnp.abs(ref1)) + 1e-6))
    assert err1 < 5e-2, f"downsample-block mismatch: rel err {err1}"

    # 2) Identity-residual Bottleneck (stride 1, inplanes == planes * 4).
    x2 = jax.random.normal(kx2, (2, 128, 8, 8), jnp.float32)           # NCHW
    params2 = init_bottleneck_params(kp2, inplanes=128, planes=32, stride=1)
    out2 = jax.block_until_ready(fwd(pack_bottleneck(params2), x2, stride=1))
    ref2 = bottleneck_ref(params2, x2)
    assert out2.shape == (2, 128, 8, 8)
    assert bool(jnp.all(jnp.isfinite(out2)))
    err2 = float(jnp.max(jnp.abs(out2 - ref2)) / (jnp.max(jnp.abs(ref2)) + 1e-6))
    assert err2 < 5e-2, f"identity-block mismatch: rel err {err2}"

    print("KERNEL_OK")
</pallas_src>

<mosaic_0001>
module attributes {stable_mosaic.version = 11 : i64} {
  func.func @_conv1x1_bias_relu_kernel(%arg0: i32, %arg1: memref<256x64xbf16, #tpu.memory_space<vmem>>, %arg2: memref<64x32xbf16, #tpu.memory_space<vmem>>, %arg3: memref<1x32xf32, #tpu.memory_space<vmem>>, %arg4: memref<256x32xbf16, #tpu.memory_space<vmem>>) attributes {dimension_semantics = [#tpu.dimension_semantics<parallel>], iteration_bounds = array<i64: 2>, scalar_prefetch = 0 : i64, scratch_operands = 0 : i64, tpu.core_type = #tpu.core_type<tc>, window_params = [{transform_indices = @transform_0, window_bounds = array<i64: 256, 64>}, {pipeline_mode = #tpu.pipeline_mode<synchronous>, transform_indices = @transform_1, window_bounds = array<i64: 64, 32>}, {pipeline_mode = #tpu.pipeline_mode<synchronous>, transform_indices = @transform_2, window_bounds = array<i64: 1, 32>}, {transform_indices = @transform_3, window_bounds = array<i64: 256, 32>}]} {
    %c0 = arith.constant 0 : index
    %c0_0 = arith.constant 0 : index
    %0 = vector.load %arg1[%c0, %c0_0] : memref<256x64xbf16, #tpu.memory_space<vmem>>, vector<256x64xbf16>
    %c0_1 = arith.constant 0 : index
    %c0_2 = arith.constant 0 : index
    %1 = vector.load %arg2[%c0_1, %c0_2] : memref<64x32xbf16, #tpu.memory_space<vmem>>, vector<64x32xbf16>
    %cst = arith.constant dense<0.000000e+00> : vector<256x32xf32>
    %2 = tpu.matmul %0, %1, %cst {dimension_numbers = #tpu.dot_dimension_numbers<[1], [0], [0], [1], [0, 0, 1, 1], [], []>} : vector<256x64xbf16>, vector<64x32xbf16>, vector<256x32xf32> -> vector<256x32xf32>
    %c0_3 = arith.constant 0 : index
    %c0_4 = arith.constant 0 : index
    %3 = vector.load %arg3[%c0_3, %c0_4] : memref<1x32xf32, #tpu.memory_space<vmem>>, vector<1x32xf32>
    %4 = vector.broadcast %3 : vector<1x32xf32> to vector<256x32xf32>
    %5 = arith.addf %2, %4 : vector<256x32xf32>
    %cst_5 = arith.constant 0.000000e+00 : f32
    %6 = vector.broadcast %cst_5 : f32 to vector<256x32xf32>
    %7 = arith.maximumf %5, %6 : vector<256x32xf32>
    %8 = arith.truncf %7 : vector<256x32xf32> to vector<256x32xbf16>
    %c0_6 = arith.constant 0 : index
    %c0_7 = arith.constant 0 : index
    %9 = vector.load %arg4[%c0_6, %c0_7] : memref<256x32xbf16, #tpu.memory_space<vmem>>, vector<256x32xbf16>
    tpu.vector_store %arg4[%c0_6, %c0_7], %8 {strides = array<i32>} : memref<256x32xbf16, #tpu.memory_space<vmem>>, vector<256x32xbf16>,
    return
  }
  func.func @transform_0(%arg0: i32) -> (i32, i32) {
    %c0_i32 = arith.constant 0 : i32
    %c0_i32_0 = arith.constant 0 : i32
    return %arg0, %c0_i32 : i32, i32
  }
  func.func @transform_1(%arg0: i32) -> (i32, i32) {
    %c0_i32 = arith.constant 0 : i32
    %c0_i32_0 = arith.constant 0 : i32
    %c0_i32_1 = arith.constant 0 : i32
    return %c0_i32, %c0_i32_0 : i32, i32
  }
  func.func @transform_2(%arg0: i32) -> (i32, i32) {
    %c0_i32 = arith.constant 0 : i32
    %c0_i32_0 = arith.constant 0 : i32
    %c0_i32_1 = arith.constant 0 : i32
    return %c0_i32, %c0_i32_0 : i32, i32
  }
  func.func @transform_3(%arg0: i32) -> (i32, i32) {
    %c0_i32 = arith.constant 0 : i32
    %c0_i32_0 = arith.constant 0 : i32
    return %arg0, %c0_i32 : i32, i32
  }
}

module attributes {stable_mosaic.version = 11 : i64} {
  func.func @_tail_downsample_kernel(%arg0: i32, %arg1: memref<64x288xbf16, #tpu.memory_space<vmem>>, %arg2: memref<288x32xbf16, #tpu.memory_space<vmem>>, %arg3: memref<1x32xf32, #tpu.memory_space<vmem>>, %arg4: memref<32x128xbf16, #tpu.memory_space<vmem>>, %arg5: memref<1x128xf32, #tpu.memory_space<vmem>>, %arg6: memref<64x64xbf16, #tpu.memory_space<vmem>>, %arg7: memref<64x128xbf16, #tpu.memory_space<vmem>>, %arg8: memref<1x128xf32, #tpu.memory_space<vmem>>, %arg9: memref<64x128xbf16, #tpu.memory_space<vmem>>) attributes {dimension_semantics = [#tpu.dimension_semantics<parallel>], iteration_bounds = array<i64: 2>, scalar_prefetch = 0 : i64, scratch_operands = 0 : i64, tpu.core_type = #tpu.core_type<tc>, window_params = [{transform_indices = @transform_0, window_bounds = array<i64: 64, 288>}, {pipeline_mode = #tpu.pipeline_mode<synchronous>, transform_indices = @transform_1, window_bounds = array<i64: 288, 32>}, {pipeline_mode = #tpu.pipeline_mode<synchronous>, transform_indices = @transform_2, window_bounds = array<i64: 1, 32>}, {pipeline_mode = #tpu.pipeline_mode<synchronous>, transform_indices = @transform_3, window_bounds = array<i64: 32, 128>}, {pipeline_mode = #tpu.pipeline_mode<synchronous>, transform_indices = @transform_4, window_bounds = array<i64: 1, 128>}, {transform_indices = @transform_5, window_bounds = array<i64: 64, 64>}, {pipeline_mode = #tpu.pipeline_mode<synchronous>, transform_indices = @transform_6, window_bounds = array<i64: 64, 128>}, {pipeline_mode = #tpu.pipeline_mode<synchronous>, transform_indices = @transform_7, window_bounds = array<i64: 1, 128>}, {transform_indices = @transform_8, window_bounds = array<i64: 64, 128>}]} {
    %c0 = arith.constant 0 : index
    %c0_0 = arith.constant 0 : index
    %0 = vector.load %arg1[%c0, %c0_0] : memref<64x288xbf16, #tpu.memory_space<vmem>>, vector<64x288xbf16>
    %c0_1 = arith.constant 0 : index
    %c0_2 = arith.constant 0 : index
    %1 = vector.load %arg2[%c0_1, %c0_2] : memref<288x32xbf16, #tpu.memory_space<vmem>>, vector<288x32xbf16>
    %cst = arith.constant dense<0.000000e+00> : vector<64x32xf32>
    %2 = tpu.matmul %0, %1, %cst {dimension_numbers = #tpu.dot_dimension_numbers<[1], [0], [0], [1], [0, 0, 1, 1], [], []>} : vector<64x288xbf16>, vector<288x32xbf16>, vector<64x32xf32> -> vector<64x32xf32>
    %c0_3 = arith.constant 0 : index
    %c0_4 = arith.constant 0 : index
    %3 = vector.load %arg3[%c0_3, %c0_4] : memref<1x32xf32, #tpu.memory_space<vmem>>, vector<1x32xf32>
    %4 = vector.broadcast %3 : vector<1x32xf32> to vector<64x32xf32>
    %5 = arith.addf %2, %4 : vector<64x32xf32>
    %cst_5 = arith.constant 0.000000e+00 : f32
    %6 = vector.broadcast %cst_5 : f32 to vector<64x32xf32>
    %7 = arith.maximumf %5, %6 : vector<64x32xf32>
    %8 = arith.truncf %7 : vector<64x32xf32> to vector<64x32xbf16>
    %c0_6 = arith.constant 0 : index
    %c0_7 = arith.constant 0 : index
    %9 = vector.load %arg6[%c0_6, %c0_7] : memref<64x64xbf16, #tpu.memory_space<vmem>>, vector<64x64xbf16>
    %c0_8 = arith.constant 0 : index
    %c0_9 = arith.constant 0 : index
    %10 = vector.load %arg7[%c0_8, %c0_9] : memref<64x128xbf16, #tpu.memory_space<vmem>>, vector<64x128xbf16>
    %cst_10 = arith.constant dense<0.000000e+00> : vector<64x128xf32>
    %11 = tpu.matmul %9, %10, %cst_10 {dimension_numbers = #tpu.dot_dimension_numbers<[1], [0], [0], [1], [0, 0, 1, 1], [], []>} : vector<64x64xbf16>, vector<64x128xbf16>, vector<64x128xf32> -> vector<64x128xf32>
    %c0_11 = arith.constant 0 : index
    %c0_12 = arith.constant 0 : index
    %12 = vector.load %arg8[%c0_11, %c0_12] : memref<1x128xf32, #tpu.memory_space<vmem>>, vector<1x128xf32>
    %13 = vector.broadcast %12 : vector<1x128xf32> to vector<64x128xf32>
    %14 = arith.addf %11, %13 : vector<64x128xf32>
    %c0_13 = arith.constant 0 : index
    %c0_14 = arith.constant 0 : index
    %15 = vector.load %arg4[%c0_13, %c0_14] : memref<32x128xbf16, #tpu.memory_space<vmem>>, vector<32x128xbf16>
    %cst_15 = arith.constant dense<0.000000e+00> : vector<64x128xf32>
    %16 = tpu.matmul %8, %15, %cst_15 {dimension_numbers = #tpu.dot_dimension_numbers<[1], [0], [0], [1], [0, 0, 1, 1], [], []>} : vector<64x32xbf16>, vector<32x128xbf16>, vector<64x128xf32> -> vector<64x128xf32>
    %c0_16 = arith.constant 0 : index
    %c0_17 = arith.constant 0 : index
    %17 = vector.load %arg5[%c0_16, %c0_17] : memref<1x128xf32, #tpu.memory_space<vmem>>, vector<1x128xf32>
    %18 = vector.broadcast %17 : vector<1x128xf32> to vector<64x128xf32>
    %19 = arith.addf %16, %18 : vector<64x128xf32>
    %20 = arith.addf %19, %14 : vector<64x128xf32>
    %cst_18 = arith.constant 0.000000e+00 : f32
    %21 = vector.broadcast %cst_18 : f32 to vector<64x128xf32>
    %22 = arith.maximumf %20, %21 : vector<64x128xf32>
    %23 = arith.truncf %22 : vector<64x128xf32> to vector<64x128xbf16>
    %c0_19 = arith.constant 0 : index
    %c0_20 = arith.constant 0 : index
    %24 = vector.load %arg9[%c0_19, %c0_20] : memref<64x128xbf16, #tpu.memory_space<vmem>>, vector<64x128xbf16>
    tpu.vector_store %arg9[%c0_19, %c0_20], %23 {strides = array<i32>} : memref<64x128xbf16, #tpu.memory_space<vmem>>, vector<64x128xbf16>,
    return
  }
  func.func @transform_0(%arg0: i32) -> (i32, i32) {
    %c0_i32 = arith.constant 0 : i32
    %c0_i32_0 = arith.constant 0 : i32
    return %arg0, %c0_i32 : i32, i32
  }
  func.func @transform_1(%arg0: i32) -> (i32, i32) {
    %c0_i32 = arith.constant 0 : i32
    %c0_i32_0 = arith.constant 0 : i32
    %c0_i32_1 = arith.constant 0 : i32
    return %c0_i32, %c0_i32_0 : i32, i32
  }
  func.func @transform_2(%arg0: i32) -> (i32, i32) {
    %c0_i32 = arith.constant 0 : i32
    %c0_i32_0 = arith.constant 0 : i32
    %c0_i32_1 = arith.constant 0 : i32
    return %c0_i32, %c0_i32_0 : i32, i32
  }
  func.func @transform_3(%arg0: i32) -> (i32, i32) {
    %c0_i32 = arith.constant 0 : i32
    %c0_i32_0 = arith.constant 0 : i32
    %c0_i32_1 = arith.constant 0 : i32
    return %c0_i32, %c0_i32_0 : i32, i32
  }
  func.func @transform_4(%arg0: i32) -> (i32, i32) {
    %c0_i32 = arith.constant 0 : i32
    %c0_i32_0 = arith.constant 0 : i32
    %c0_i32_1 = arith.constant 0 : i32
    return %c0_i32, %c0_i32_0 : i32, i32
  }
  func.func @transform_5(%arg0: i32) -> (i32, i32) {
    %c0_i32 = arith.constant 0 : i32
    %c0_i32_0 = arith.constant 0 : i32
    return %arg0, %c0_i32 : i32, i32
  }
  func.func @transform_6(%arg0: i32) -> (i32, i32) {
    %c0_i32 = arith.constant 0 : i32
    %c0_i32_0 = arith.constant 0 : i32
    %c0_i32_1 = arith.constant 0 : i32
    return %c0_i32, %c0_i32_0 : i32, i32
  }
  func.func @transform_7(%arg0: i32) -> (i32, i32) {
    %c0_i32 = arith.constant 0 : i32
    %c0_i32_0 = arith.constant 0 : i32
    %c0_i32_1 = arith.constant 0 : i32
    return %c0_i32, %c0_i32_0 : i32, i32
  }
  func.func @transform_8(%arg0: i32) -> (i32, i32) {
    %c0_i32 = arith.constant 0 : i32
    %c0_i32_0 = arith.constant 0 : i32
    return %arg0, %c0_i32 : i32, i32
  }
}

</mosaic_0001>

<bundles_post_ra>
// kernel: bottleneck_forward.2
= control target key start
LH: loop header
LB: loop body
LE: loop exit
PB: predicated region body
PF: predicated region fallthrough
CT: control target
= control target key end

     0   :  { %s1021_s12 = smov 0   ;;  %s1194_s0 = inlined_call_operand.vmem [shape: bf16[512,64], index: 0, kind: input, shape index: {}]   ;;  %s1195_s1 = inlined_call_operand.vmem [shape: bf16[64,32], index: 1, kind: input, shape index: {}]   ;;  %s1196_s2 = inlined_call_operand.vmem [shape: f32[1,32], index: 2, kind: input, shape index: {}]   ;;  %s1197_s3 = inlined_call_operand.vmem [shape: bf16[512,32], index: 3, kind: output, shape index: {}]  }
   0x1 LB: > { %s785_s13 = sadd.s32 4294967295, %s999_s12   ;;  %p789_p0 = scmp.ge.s32.totalorder %s999_s12, 1  ;;  %s999_s12 = sphi %s1021_s12, %s13_s12  }
   0x2   : > { %p138_p1 = scmp.lt.s32.totalorder %s999_s12, 3 }
   0x4   : > { %p139_p2 = pnand %p789_p0, %p138_p1 }
   0x5   : > { %s790_s16 = sshll.u32 (!%p139_p2), %s785_s13, 5 }
   0x6   : > { %142 = sbr.rel (%p139_p2) target bundleno = 259 (0x103), region = 32  ;;  %p163_p3 = scmp.lt.s32.totalorder (!%p139_p2), %s790_s16, 63 }
   0xb   : > { %v973_v0 = vld [vmem:[%s1195_s1 + $0x18] sm:$0xff]   ;;  %v974_v1 = vld [vmem:[%s1195_s1 + $0x10] sm:$0xff]   ;;  %s1199_s16 = smov (!%p163_p3, %s790_s16), 63  ;;  %v975_v2 = vld [vmem:[%s1195_s1 + $0x8] sm:$0xff]   ;;  %vm326_vm0 = vcmask 523264   ;;  %vm696_vm1 = vcmask 257024  }
   0xc   : > { %917 = vmatprep.subr.bf16.mxu0 %v973_v0  ;;  %957 = vmatprep.subr.bf16.mxu1 %v973_v0  ;;  %s791_s21 = sshll.u32 %s1199_s16, 2  ;;  %v976_v3 = vld [vmem:[%s1195_s1] sm:$0xff]  }
   0xd   : > { %918 = vmatpush3.bf16.msra.mxu0 %v973_v0  ;;  %961 = vmatpush3.bf16.msra.mxu1 %v973_v0  ;;  %s1049_s26 = scalar_lea.vmem %s1194_s0, %s791_s21  ;;  %v1086_v20 = vld [vmem:[%s1196_s2] ss:$0 sm:$0xff]  ;;  %s1097_s4 = scalar_lea.vmem %s1197_s3, %s791_s21 }
   0xe   : > { %919 = vmatprep.subr.bf16.mxu0 %v974_v1  ;;  %958 = vmatprep.subr.bf16.mxu1 %v974_v1  ;;  %v977_v4 = vld [vmem:[%s1049_s26] sm:$0xff]   ;;  %v979_v6 = vld [vmem:[%s1049_s26 + $0x8] sm:$0xff]   ;;  %v981_v8 = vld [vmem:[%s1049_s26 + $0x10] sm:$0xff]  }
   0xf   : > { %v978_v5 = vld [vmem:[%s1049_s26 + $0x40] sm:$0xff]   ;;  %925 = vmatprep.mubr.msk.bf16.mxu0 %vm326_vm0, %v977_v4  ;;  %v980_v7 = vld [vmem:[%s1049_s26 + $0x48] sm:$0xff]   ;;  %v982_v9 = vld [vmem:[%s1049_s26 + $0x50] sm:$0xff]  }
  0x10   : > { %941 = vmatprep.mubr.msk.bf16.mxu1 %vm326_vm0, %v978_v5  ;;  %v983_v10 = vld [vmem:[%s1049_s26 + $0x18] sm:$0xff]   ;;  %v985_v12 = vld [vmem:[%s1049_s26 + $0x20] sm:$0xff]   ;;  %v987_v14 = vld [vmem:[%s1049_s26 + $0x28] sm:$0xff]  }
  0x11   : > { %920 = vmatpush3.bf16.msra.mxu0 %v974_v1  ;;  %962 = vmatpush3.bf16.msra.mxu1 %v974_v1  ;;  %v984_v11 = vld [vmem:[%s1049_s26 + $0x58] sm:$0xff]   ;;  %v986_v13 = vld [vmem:[%s1049_s26 + $0x60] sm:$0xff]   ;;  %v988_v15 = vld [vmem:[%s1049_s26 + $0x68] sm:$0xff]  }
  0x12   : > { %921 = vmatprep.subr.bf16.mxu0 %v975_v2  ;;  %959 = vmatprep.subr.bf16.mxu1 %v975_v2  ;;  %v989_v16 = vld [vmem:[%s1049_s26 + $0x30] sm:$0xff]   ;;  %v991_v18 = vld [vmem:[%s1049_s26 + $0x38] sm:$0xff]  }
  0x13   : > { %v990_v17 = vld [vmem:[%s1049_s26 + $0x70] sm:$0xff]   ;;  %v992_v19 = vld [vmem:[%s1049_s26 + $0x78] sm:$0xff]  }
  0x15   : > { %922 = vmatpush3.bf16.msra.mxu0 %v975_v2  ;;  %963 = vmatpush3.bf16.msra.mxu1 %v975_v2 }
  0x16   : > { %923 = vmatprep.subr.bf16.mxu0 %v976_v3  ;;  %960 = vmatprep.subr.bf16.mxu1 %v976_v3 }
  0x19   : > { %924 = vmatpush3.bf16.msra.mxu0 %v976_v3  ;;  %964 = vmatpush3.bf16.msra.mxu1 %v976_v3 }
  0x1c   : > { %926 = vmatmul.mubr.msk.bf16.vlgmr.msra.gmra.mxu0 %vm326_vm0, %v979_v6  ;;  %942 = vmatmul.mubr.msk.bf16.vlgmr.msra.gmra.mxu1 %vm326_vm0, %v980_v7 }
  0x1d   : > { %929 = vmatprep.mubr.msk.bf16.mxu0 %vm326_vm0, %v981_v8  ;;  %945 = vmatprep.mubr.msk.bf16.mxu1 %vm326_vm0, %v982_v9 }
  0x24   : > { %930 = vmatmul.mubr.msk.bf16.gmra.mxu0 %vm326_vm0, %v983_v10  ;;  %946 = vmatmul.mubr.msk.bf16.gmra.mxu1 %vm326_vm0, %v984_v11 }
  0x25   : > { %933 = vmatprep.mubr.msk.bf16.mxu0 %vm326_vm0, %v985_v12  ;;  %949 = vmatprep.mubr.msk.bf16.mxu1 %vm326_vm0, %v986_v13 }
  0x2c   : > { %934 = vmatmul.mubr.msk.bf16.gmra.mxu0 %vm326_vm0, %v987_v14  ;;  %950 = vmatmul.mubr.msk.bf16.gmra.mxu1 %vm326_vm0, %v988_v15 }
  0x2d   : > { %937 = vmatprep.mubr.msk.bf16.mxu0 %vm326_vm0, %v989_v16  ;;  %953 = vmatprep.mubr.msk.bf16.mxu1 %vm326_vm0, %v990_v17 }
  0x34   : > { %938 = vmatmul.mubr.msk.bf16.gmra.mxu0 %vm326_vm0, %v991_v18  ;;  %954 = vmatmul.mubr.msk.bf16.gmra.mxu1 %vm326_vm0, %v992_v19 }
  0xdc   : > { %v927_v21 = vpop.f32.mrf.mxu0  ;;  %v943_v22 = vpop.f32.mrf.mxu1 }
  0xdd   : > { %v418_v23 = vadd.f32 %v927_v21, %v1086_v20  ;;  %v482_v24 = vadd.f32 %v943_v22, %v1086_v20 }
  0xde   : > { %v409_v25 = vpop.f32.mrf.mxu0  ;;  %v473_v26 = vpop.f32.mrf.mxu1 }
  0xdf   : > { %v538_v27 = vmax.f32 %v418_v23, 0.0  ;;  %v554_v28 = vmax.f32 %v482_v24, 0.0  ;;  %v410_v29 = vadd.f32 %v1086_v20, %v409_v25  ;;  %v474_v30 = vadd.f32 %v1086_v20, %v473_v26 }
  0xe0   : > { %v928_v31 = vpop.f32.mrf.mxu0  ;;  %v944_v32 = vpop.f32.mrf.mxu1 }
  0xe1   : > { %v867_v33 = vpack.c.bf16 %v538_v27, %v538_v27  ;;  %v883_v34 = vpack.c.bf16 %v554_v28, %v554_v28  ;;  %v536_v35 = vmax.f32 %v410_v29, 0.0  ;;  %v552_v36 = vmax.f32 %v474_v30, 0.0 }
  0xe2   : > { %v421_v37 = vadd.f32 %v928_v31, %v1086_v20  ;;  %v485_v38 = vadd.f32 %v944_v32, %v1086_v20  ;;  %v412_v39 = vpop.f32.mrf.mxu0  ;;  %v476_v40 = vpop.f32.mrf.mxu1 }
  0xe3   : > { %699 = vst.msk [vmem:[%s1097_s4 + $0x8] sm:$0xf] %vm696_vm1, %v867_v33  ;;  %715 = vst.msk [vmem:[%s1097_s4 + $0x48] sm:$0xf] %vm696_vm1, %v883_v34  ;;  %v865_v41 = vpack.c.bf16 %v536_v35, %v536_v35  ;;  %v881_v42 = vpack.c.bf16 %v552_v36, %v552_v36  ;;  %v413_v43 = vadd.f32 %v1086_v20, %v412_v39 }
  0xe4   : > { %v477_v44 = vadd.f32 %v1086_v20, %v476_v40  ;;  %v539_v45 = vmax.f32 %v421_v37, 0.0  ;;  %v555_v46 = vmax.f32 %v485_v38, 0.0  ;;  %v931_v47 = vpop.f32.mrf.mxu0  ;;  %v947_v48 = vpop.f32.mrf.mxu1 }
  0xe5   : > { %697 = vst.msk [vmem:[%s1097_s4] sm:$0xf] %vm696_vm1, %v865_v41  ;;  %713 = vst.msk [vmem:[%s1097_s4 + $0x40] sm:$0xf] %vm696_vm1, %v881_v42  ;;  %v537_v49 = vmax.f32 %v413_v43, 0.0  ;;  %v434_v51 = vadd.f32 %v931_v47, %v1086_v20  ;;  %v498_v52 = vadd.f32 %v947_v48, %v1086_v20 }
  0xe6   : > { %v553_v50 = vmax.f32 %v477_v44, 0.0  ;;  %v868_v53 = vpack.c.bf16 %v539_v45, %v539_v45  ;;  %v884_v54 = vpack.c.bf16 %v555_v46, %v555_v46  ;;  %v425_v55 = vpop.f32.mrf.mxu0  ;;  %v489_v56 = vpop.f32.mrf.mxu1 }
  0xe7   : > { %v866_v57 = vpack.c.bf16 %v537_v49, %v537_v49  ;;  %v542_v59 = vmax.f32 %v434_v51, 0.0  ;;  %v558_v60 = vmax.f32 %v498_v52, 0.0  ;;  %v426_v61 = vadd.f32 %v1086_v20, %v425_v55 }
  0xe8   : > { %v882_v58 = vpack.c.bf16 %v553_v50, %v553_v50  ;;  %700 = vst.msk [vmem:[%s1097_s4 + $0xc] sm:$0xf] %vm696_vm1, %v868_v53  ;;  %716 = vst.msk [vmem:[%s1097_s4 + $0x4c] sm:$0xf] %vm696_vm1, %v884_v54  ;;  %v490_v62 = vadd.f32 %v1086_v20, %v489_v56  ;;  %v932_v63 = vpop.f32.mrf.mxu0  ;;  %v948_v0 = vpop.f32.mrf.mxu1 }
  0xe9   : > { %698 = vst.msk [vmem:[%s1097_s4 + $0x4] sm:$0xf] %vm696_vm1, %v866_v57  ;;  %v871_v1 = vpack.c.bf16 %v542_v59, %v542_v59  ;;  %v887_v2 = vpack.c.bf16 %v558_v60, %v558_v60  ;;  %v437_v3 = vadd.f32 %v932_v63, %v1086_v20  ;;  %v501_v4 = vadd.f32 %v948_v0, %v1086_v20 }
  0xea   : > { %714 = vst.msk [vmem:[%s1097_s4 + $0x44] sm:$0xf] %vm696_vm1, %v882_v58  ;;  %v540_v5 = vmax.f32 %v426_v61, 0.0  ;;  %v556_v6 = vmax.f32 %v490_v62, 0.0  ;;  %v428_v7 = vpop.f32.mrf.mxu0  ;;  %v492_v8 = vpop.f32.mrf.mxu1 }
  0xeb   : > { %703 = vst.msk [vmem:[%s1097_s4 + $0x18] sm:$0xf] %vm696_vm1, %v871_v1  ;;  %719 = vst.msk [vmem:[%s1097_s4 + $0x58] sm:$0xf] %vm696_vm1, %v887_v2  ;;  %v543_v9 = vmax.f32 %v437_v3, 0.0  ;;  %v559_v10 = vmax.f32 %v501_v4, 0.0  ;;  %v429_v11 = vadd.f32 %v1086_v20, %v428_v7  ;;  %v493_v12 = vadd.f32 %v1086_v20, %v492_v8 }
  0xec   : > { %v869_v13 = vpack.c.bf16 %v540_v5, %v540_v5  ;;  %v885_v14 = vpack.c.bf16 %v556_v6, %v556_v6  ;;  %v935_v15 = vpop.f32.mrf.mxu0  ;;  %v951_v16 = vpop.f32.mrf.mxu1 }
  0xed   : > { %v872_v17 = vpack.c.bf16 %v543_v9, %v543_v9  ;;  %v888_v18 = vpack.c.bf16 %v559_v10, %v559_v10  ;;  %v541_v19 = vmax.f32 %v429_v11, 0.0  ;;  %v557_v21 = vmax.f32 %v493_v12, 0.0 }
  0xee   : > { %701 = vst.msk [vmem:[%s1097_s4 + $0x10] sm:$0xf] %vm696_vm1, %v869_v13  ;;  %717 = vst.msk [vmem:[%s1097_s4 + $0x50] sm:$0xf] %vm696_vm1, %v885_v14  ;;  %v450_v22 = vadd.f32 %v935_v15, %v1086_v20  ;;  %v514_v23 = vadd.f32 %v951_v16, %v1086_v20  ;;  %v441_v24 = vpop.f32.mrf.mxu0  ;;  %v505_v25 = vpop.f32.mrf.mxu1 }
  0xef   : > { %704 = vst.msk [vmem:[%s1097_s4 + $0x1c] sm:$0xf] %vm696_vm1, %v872_v17  ;;  %720 = vst.msk [vmem:[%s1097_s4 + $0x5c] sm:$0xf] %vm696_vm1, %v888_v18  ;;  %v870_v26 = vpack.c.bf16 %v541_v19, %v541_v19  ;;  %v886_v27 = vpack.c.bf16 %v557_v21, %v557_v21  ;;  %v442_v28 = vadd.f32 %v1086_v20, %v441_v24 }
  0xf0   : > { %v506_v29 = vadd.f32 %v1086_v20, %v505_v25  ;;  %v546_v30 = vmax.f32 %v450_v22, 0.0  ;;  %v562_v31 = vmax.f32 %v514_v23, 0.0  ;;  %v936_v32 = vpop.f32.mrf.mxu0  ;;  %v952_v33 = vpop.f32.mrf.mxu1 }
  0xf1   : > { %702 = vst.msk [vmem:[%s1097_s4 + $0x14] sm:$0xf] %vm696_vm1, %v870_v26  ;;  %718 = vst.msk [vmem:[%s1097_s4 + $0x54] sm:$0xf] %vm696_vm1, %v886_v27  ;;  %v544_v34 = vmax.f32 %v442_v28, 0.0  ;;  %v453_v36 = vadd.f32 %v936_v32, %v1086_v20  ;;  %v517_v37 = vadd.f32 %v952_v33, %v1086_v20 }
  0xf2   : > { %v560_v35 = vmax.f32 %v506_v29, 0.0  ;;  %v875_v38 = vpack.c.bf16 %v546_v30, %v546_v30  ;;  %v891_v39 = vpack.c.bf16 %v562_v31, %v562_v31  ;;  %v444_v40 = vpop.f32.mrf.mxu0  ;;  %v508_v41 = vpop.f32.mrf.mxu1 }
  0xf3   : > { %v873_v42 = vpack.c.bf16 %v544_v34, %v544_v34  ;;  %v547_v44 = vmax.f32 %v453_v36, 0.0  ;;  %v563_v45 = vmax.f32 %v517_v37, 0.0  ;;  %v445_v46 = vadd.f32 %v1086_v20, %v444_v40 }
  0xf4   : > { %v889_v43 = vpack.c.bf16 %v560_v35, %v560_v35  ;;  %707 = vst.msk [vmem:[%s1097_s4 + $0x28] sm:$0xf] %vm696_vm1, %v875_v38  ;;  %723 = vst.msk [vmem:[%s1097_s4 + $0x68] sm:$0xf] %vm696_vm1, %v891_v39  ;;  %v509_v47 = vadd.f32 %v1086_v20, %v508_v41  ;;  %v939_v48 = vpop.f32.mrf.mxu0  ;;  %v955_v49 = vpop.f32.mrf.mxu1 }
  0xf5   : > { %705 = vst.msk [vmem:[%s1097_s4 + $0x20] sm:$0xf] %vm696_vm1, %v873_v42  ;;  %v876_v50 = vpack.c.bf16 %v547_v44, %v547_v44  ;;  %v892_v51 = vpack.c.bf16 %v563_v45, %v563_v45  ;;  %v466_v52 = vadd.f32 %v939_v48, %v1086_v20  ;;  %v530_v53 = vadd.f32 %v955_v49, %v1086_v20 }
  0xf6   : > { %721 = vst.msk [vmem:[%s1097_s4 + $0x60] sm:$0xf] %vm696_vm1, %v889_v43  ;;  %v545_v54 = vmax.f32 %v445_v46, 0.0  ;;  %v561_v55 = vmax.f32 %v509_v47, 0.0  ;;  %v457_v56 = vpop.f32.mrf.mxu0  ;;  %v521_v57 = vpop.f32.mrf.mxu1 }
  0xf7   : > { %708 = vst.msk [vmem:[%s1097_s4 + $0x2c] sm:$0xf] %vm696_vm1, %v876_v50  ;;  %724 = vst.msk [vmem:[%s1097_s4 + $0x6c] sm:$0xf] %vm696_vm1, %v892_v51  ;;  %v550_v58 = vmax.f32 %v466_v52, 0.0  ;;  %v566_v59 = vmax.f32 %v530_v53, 0.0  ;;  %v458_v60 = vadd.f32 %v1086_v20, %v457_v56  ;;  %v522_v61 = vadd.f32 %v1086_v20, %v521_v57 }
  0xf8   : > { %v874_v62 = vpack.c.bf16 %v545_v54, %v545_v54  ;;  %v890_v63 = vpack.c.bf16 %v561_v55, %v561_v55  ;;  %v940_v0 = vpop.f32.mrf.mxu0  ;;  %v956_v1 = vpop.f32.mrf.mxu1 }
  0xf9   : > { %v879_v2 = vpack.c.bf16 %v550_v58, %v550_v58  ;;  %v895_v3 = vpack.c.bf16 %v566_v59, %v566_v59  ;;  %v548_v4 = vmax.f32 %v458_v60, 0.0  ;;  %v564_v5 = vmax.f32 %v522_v61, 0.0 }
  0xfa   : > { %706 = vst.msk [vmem:[%s1097_s4 + $0x24] sm:$0xf] %vm696_vm1, %v874_v62  ;;  %722 = vst.msk [vmem:[%s1097_s4 + $0x64] sm:$0xf] %vm696_vm1, %v890_v63  ;;  %v469_v6 = vadd.f32 %v940_v0, %v1086_v20  ;;  %v533_v7 = vadd.f32 %v956_v1, %v1086_v20  ;;  %v460_v8 = vpop.f32.mrf.mxu0  ;;  %v524_v9 = vpop.f32.mrf.mxu1 }
  0xfb   : > { %711 = vst.msk [vmem:[%s1097_s4 + $0x38] sm:$0xf] %vm696_vm1, %v879_v2  ;;  %727 = vst.msk [vmem:[%s1097_s4 + $0x78] sm:$0xf] %vm696_vm1, %v895_v3  ;;  %v877_v10 = vpack.c.bf16 %v548_v4, %v548_v4  ;;  %v893_v11 = vpack.c.bf16 %v564_v5, %v564_v5  ;;  %v461_v12 = vadd.f32 %v1086_v20, %v460_v8 }
  0xfc   : > { %v525_v13 = vadd.f32 %v1086_v20, %v524_v9  ;;  %v551_v14 = vmax.f32 %v469_v6, 0.0  ;;  %v567_v15 = vmax.f32 %v533_v7, 0.0 }
  0xfd   : > { %709 = vst.msk [vmem:[%s1097_s4 + $0x30] sm:$0xf] %vm696_vm1, %v877_v10  ;;  %725 = vst.msk [vmem:[%s1097_s4 + $0x70] sm:$0xf] %vm696_vm1, %v893_v11  ;;  %v549_v16 = vmax.f32 %v461_v12, 0.0 }
  0xfe   : > { %v565_v17 = vmax.f32 %v525_v13, 0.0  ;;  %v880_v18 = vpack.c.bf16 %v551_v14, %v551_v14  ;;  %v896_v19 = vpack.c.bf16 %v567_v15, %v567_v15 }
  0xff   : > { %v878_v21 = vpack.c.bf16 %v549_v16, %v549_v16 }
 0x100   : > { %v894_v22 = vpack.c.bf16 %v565_v17, %v565_v17  ;;  %712 = vst.msk [vmem:[%s1097_s4 + $0x3c] sm:$0xf] %vm696_vm1, %v880_v18  ;;  %728 = vst.msk [vmem:[%s1097_s4 + $0x7c] sm:$0xf] %vm696_vm1, %v896_v19 }
 0x101   : > { %710 = vst.msk [vmem:[%s1097_s4 + $0x34] sm:$0xf] %vm696_vm1, %v878_v21 }
 0x102   : > { %726 = vst.msk [vmem:[%s1097_s4 + $0x74] sm:$0xf] %vm696_vm1, %v894_v22 }
 0x103 PF: > { %s13_s12 = sadd.s32 1, %s999_s12  }
 0x104   : > { %p10_p4 = scmp.ge.s32.totalorder %s13_s12, 4  }
 0x106   :  { %12 = sbr.rel (!%p10_p4) target bundleno = 1 (0x1), region = 62 }

// kernel: bottleneck_forward.3
= control target key start
LH: loop header
LB: loop body
LE: loop exit
PB: predicated region body
PF: predicated region fallthrough
CT: control target
= control target key end

     0   :  { %s1399_s27 = smov 0   ;;  %s1530_s0 = inlined_call_operand.vmem [shape: bf16[128,288], index: 0, kind: input, shape index: {}]   ;;  %s1531_s1 = inlined_call_operand.vmem [shape: bf16[288,32], index: 1, kind: input, shape index: {}]   ;;  %s1532_s2 = inlined_call_operand.vmem [shape: f32[1,32], index: 2, kind: input, shape index: {}]   ;;  %s1533_s3 = inlined_call_operand.vmem [shape: bf16[32,128], index: 3, kind: input, shape index: {}]   ;;  %s1534_s4 = inlined_call_operand.vmem [shape: f32[1,128], index: 4, kind: input, shape index: {}]   ;;  %s1535_s5 = inlined_call_operand.vmem [shape: bf16[128,64], index: 5, kind: input, shape index: {}]   ;;  %s1536_s6 = inlined_call_operand.vmem [shape: bf16[64,128], index: 6, kind: input, shape index: {}]   ;;  %s1537_s7 = inlined_call_operand.vmem [shape: f32[1,128], index: 7, kind: input, shape index: {}]   ;;  %s1538_s8 = inlined_call_operand.vmem [shape: bf16[128,128], index: 8, kind: output, shape index: {}]  }
   0x1 LB: > { %s1086_s28 = sadd.s32 4294967295, %s1352_s27   ;;  %p1090_p0 = scmp.ge.s32.totalorder %s1352_s27, 1  ;;  %s1352_s27 = sphi %s1399_s27, %s18_s27  }
   0x2   : > { %p275_p1 = scmp.lt.s32.totalorder %s1352_s27, 3 }
   0x4   : > { %p276_p2 = pnand %p1090_p0, %p275_p1 }
   0x5   : > { %s1091_s9 = sshll.u32 (!%p276_p2), %s1086_s28, 3 }
   0x6   : > { %279 = sbr.rel (%p276_p2) target bundleno = 485 (0x1e5), region = 52  ;;  %p316_p3 = scmp.lt.s32.totalorder (!%p276_p2), %s1091_s9, 15 }
   0xb   : > { %v1302_v0 = vld [vmem:[%s1531_s1 + $0x78] sm:$0xff]   ;;  %v1304_v2 = vld [vmem:[%s1531_s1 + $0x70] sm:$0xff]   ;;  %v1306_v4 = vld [vmem:[%s1531_s1 + $0x68] sm:$0xff]   ;;  %s1540_s9 = smov (!%p316_p3, %s1091_s9), 15  ;;  %vm562_vm0 = vcmask 261120   ;;  %vm784_vm1 = vcmask 523264  }
   0xc   : > { %v1303_v1 = vld [vmem:[%s1531_s1 + $0x38] sm:$0xff]   ;;  %1193 = vmatprep.subr.bf16.mxu0 %v1302_v0  ;;  %v1305_v3 = vld [vmem:[%s1531_s1 + $0x30] sm:$0xff]   ;;  %v1307_v5 = vld [vmem:[%s1531_s1 + $0x28] sm:$0xff]   ;;  %s1293_s24 = smul.u32 12, %s1540_s9  ;;  %s1094_s17 = sshll.u32 %s1540_s9, 2 }
   0xd   : > { %1194 = vmatpush3.bf16.msra.mxu0 %v1303_v1  ;;  %v1308_v6 = vld [vmem:[%s1531_s1 + $0x60] sm:$0xff]   ;;  %v1310_v8 = vld [vmem:[%s1531_s1 + $0x58] sm:$0xff]   ;;  %v1317_v10 = vld [vmem:[%s1531_s1 + $0x88] sm:$0xff]   ;;  %s326_s20 = scalar_lea.vmem %s1535_s5, %s1094_s17  ;;  %s332_s12 = scalar_lea.vmem %s1538_s8, %s1094_s17 }
   0xe   : > { %1195 = vmatprep.subr.bf16.mxu0 %v1304_v2  ;;  %v1309_v7 = vld [vmem:[%s1531_s1 + $0x20] sm:$0xff]   ;;  %v1311_v9 = vld [vmem:[%s1531_s1 + $0x18] sm:$0xff]   ;;  %s1446_s13 = scalar_lea.vmem %s1530_s0, %s1293_s24  ;;  %v1312_v11 = vld [vmem:[%s1531_s1 + $0x50] sm:$0xff]   ;;  %1253 = vmatprep.subr.bf16.mxu1 %v1317_v10 }
   0xf   : > { %v1313_v12 = vld [vmem:[%s1531_s1 + $0x10] sm:$0xff]   ;;  %v1314_v13 = vld [vmem:[%s1531_s1 + $0x48] sm:$0xff]   ;;  %1254 = vmatpush3.bf16.msra.mxu1 %v1317_v10  ;;  %v1322_v15 = vld [vmem:[%s1531_s1 + $0x80] sm:$0xff]  }
  0x10   : > { %v1321_v14 = vld [vmem:[%s1446_s13 + $0x4] ss:$12 sps:$4 sm:$0xff]   ;;  %v1323_v16 = vld [vmem:[%s1446_s13 + $0x8] ss:$12 sps:$4 sm:$0xff]   ;;  %1255 = vmatprep.subr.bf16.mxu1 %v1322_v15  ;;  %v1324_v17 = vld [vmem:[%s1446_s13 + $0x20] ss:$12 sps:$4 sm:$0xff]  }
  0x11   : > { %1196 = vmatpush3.bf16.msra.mxu0 %v1305_v3  ;;  %607 = vmatprep.mubr.bf16.mxu0 %v1321_v14  ;;  %v1315_v18 = vld [vmem:[%s1531_s1 + $0x8] sm:$0xff]   ;;  %v1316_v19 = vld [vmem:[%s1531_s1 + $0x40] sm:$0xff]   ;;  %v1332_v22 = vld [vmem:[%s1446_s13 + $0x50] ss:$12 sps:$4 sm:$0xff]  }
  0x12   : > { %1197 = vmatprep.subr.bf16.mxu0 %v1306_v4  ;;  %1257 = vmatprep.mubr.msk.bf16.mxu1 %vm562_vm0, %v1323_v16  ;;  %v1331_v20 = vld [vmem:[%s1446_s13 + $0x38] ss:$12 sps:$4 sm:$0xff]   ;;  %v1319_v23 = vld [vmem:[%s1446_s13] ss:$12 sps:$4 sm:$0xff]   ;;  %v1325_v25 = vld [vmem:[%s1446_s13 + $0x1c] ss:$12 sps:$4 sm:$0xff]  }
  0x13   : > { %1256 = vmatpush3.bf16.msra.mxu1 %v1322_v15  ;;  %v1318_v21 = vld [vmem:[%s1531_s1] sm:$0xff]   ;;  %v1336_v24 = vld [vmem:[%s1536_s6 + $0x18] sm:$0xff]   ;;  %v1337_v26 = vld [vmem:[%s1536_s6 + $0x10] sm:$0xff]  }
  0x14   : > { %1265 = vmatprep.subr.bf16.mxu1 %v1336_v24  ;;  %v1327_v27 = vld [vmem:[%s1446_s13 + $0x18] ss:$12 sps:$4 sm:$0xff]   ;;  %v1328_v28 = vld [vmem:[%s1446_s13 + $0x34] ss:$12 sps:$4 sm:$0xff]   ;;  %v1330_v29 = vld [vmem:[%s1446_s13 + $0x30] ss:$12 sps:$4 sm:$0xff]  }
  0x15   : > { %1198 = vmatpush3.bf16.msra.mxu0 %v1307_v5  ;;  %v1333_v30 = vld [vmem:[%s1446_s13 + $0x4c] ss:$12 sps:$4 sm:$0xff]   ;;  %v1335_v31 = vld [vmem:[%s1446_s13 + $0x48] ss:$12 sps:$4 sm:$0xff]   ;;  %v1339_v33 = vld [vmem:[%s1536_s6] sm:$0xff]  }
  0x16   : > { %1199 = vmatprep.subr.bf16.mxu0 %v1308_v6  ;;  %1258 = vmatmul.mubr.msk.bf16.vlgmr.msra.gmra.mxu1 %vm562_vm0, %v1324_v17  ;;  %v1338_v32 = vld [vmem:[%s1536_s6 + $0x8] sm:$0xff]   ;;  %v1340_v34 = vld [vmem:[%s326_s20] sm:$0xff]   ;;  %v1342_v36 = vld [vmem:[%s326_s20 + $0x10] sm:$0xff]  }
  0x17   : > { %1261 = vmatprep.mubr.msk.bf16.mxu1 %vm562_vm0, %v1331_v20  ;;  %1266 = vmatpush3.bf16.msra.mxu1 %v1336_v24  ;;  %v1341_v35 = vld [vmem:[%s326_s20 + $0x8] sm:$0xff]   ;;  %v1343_v37 = vld [vmem:[%s326_s20 + $0x18] sm:$0xff]   ;;  %v1345_v39 = vld [vmem:[%s1533_s3] sm:$0xff]  }
  0x18   : > { %1267 = vmatprep.subr.bf16.mxu1 %v1337_v26  ;;  %v1344_v38 = vld [vmem:[%s1533_s3 + $0x8] sm:$0xff]   ;;  %v1097_v44 = vld [vmem:[%s1532_s2] ss:$0 sm:$0xff] }
  0x19   : > { %1200 = vmatpush3.bf16.msra.mxu0 %v1309_v7 }
  0x1a   : > { %1201 = vmatprep.subr.bf16.mxu0 %v1310_v8 }
  0x1b   : > { %1268 = vmatpush3.bf16.msra.mxu1 %v1337_v26 }
  0x1c   : > { %1269 = vmatprep.subr.bf16.mxu1 %v1338_v32 }
  0x1d   : > { %1202 = vmatpush3.bf16.msra.mxu0 %v1311_v9 }
  0x1e   : > { %1203 = vmatprep.subr.bf16.mxu0 %v1312_v11  ;;  %1262 = vmatmul.mubr.msk.bf16.gmra.mxu1 %vm562_vm0, %v1332_v22 }
  0x1f   : > { %1270 = vmatpush3.bf16.msra.mxu1 %v1338_v32  ;;  %1273 = vmatprep.mubr.msk.bf16.mxu1 %vm784_vm1, %v1340_v34 }
  0x20   : > { %1271 = vmatprep.subr.bf16.mxu1 %v1339_v33 }
  0x21   : > { %1204 = vmatpush3.bf16.msra.mxu0 %v1313_v12 }
  0x22   : > { %1205 = vmatprep.subr.bf16.mxu0 %v1314_v13 }
  0x23   : > { %1272 = vmatpush3.bf16.msra.mxu1 %v1339_v33 }
  0x24   : > { %1281 = vmatprep.subr.bf16.mxu1 %v1344_v38 }
  0x25   : > { %1206 = vmatpush3.bf16.msra.mxu0 %v1315_v18 }
  0x26   : > { %1207 = vmatprep.subr.bf16.mxu0 %v1316_v19  ;;  %1274 = vmatmul.mubr.msk.bf16.vlgmr.msra.gmra.mxu1 %vm784_vm1, %v1341_v35 }
  0x27   : > { %1277 = vmatprep.mubr.msk.bf16.mxu1 %vm784_vm1, %v1342_v36  ;;  %1282 = vmatpush3.bf16.msra.mxu1 %v1344_v38 }
  0x28   : > { %1283 = vmatprep.subr.bf16.mxu1 %v1345_v39 }
  0x29   : > { %1208 = vmatpush3.bf16.msra.mxu0 %v1318_v21 }
  0x2b   : > { %1284 = vmatpush3.bf16.msra.mxu1 %v1345_v39 }
  0x2c   : > { %608 = vmatmul.mubr.bf16.vlgmr.msra.gmra.mxu0 %v1319_v23 }
  0x2d   : > { %615 = vmatprep.mubr.bf16.mxu0 %v1325_v25 }
  0x2e   : > { %1278 = vmatmul.mubr.msk.bf16.gmra.mxu1 %vm784_vm1, %v1343_v37 }
  0x34   : > { %616 = vmatmul.mubr.bf16.gmra.mxu0 %v1327_v27 }
  0x35   : > { %623 = vmatprep.mubr.bf16.mxu0 %v1328_v28 }
  0x3c   : > { %624 = vmatmul.mubr.bf16.gmra.mxu0 %v1330_v29 }
  0x3d   : > { %631 = vmatprep.mubr.bf16.mxu0 %v1333_v30 }
  0x44   : > { %632 = vmatmul.mubr.bf16.gmra.mxu0 %v1335_v31 }
  0xd6   : > { %v1259_v40 = vpop.f32.mrf.mxu1 }
  0xd8   : > { %v674_v42 = vpop.f32.mrf.mxu1 }
  0xda   : > { %v1260_v47 = vpop.f32.mrf.mxu1 }
  0xdc   : > { %v677_v52 = vpop.f32.mrf.mxu1 }
  0xde   : > { %v1263_v59 = vpop.f32.mrf.mxu1 }
  0xe0   : > { %v690_v3 = vpop.f32.mrf.mxu1 }
  0xe2   : > { %v1264_v10 = vpop.f32.mrf.mxu1 }
  0xe4   : > { %v693_v18 = vpop.f32.mrf.mxu1 }
  0xe6   : > { %v1275_v37 = vpop.f32.mrf.mxu1 }
  0xe8   : > { %v831_v38 = vpop.f32.mrf.mxu1 }
  0xea   : > { %v1276_v39 = vpop.f32.mrf.mxu1 }
  0xec   : > { %v1209_v41 = vpop.f32.mrf.mxu0 }
  0xee   : > { %v1210_v43 = vpop.f32.mrf.mxu0 }
  0xef   : > { %v1211_v45 = vadd.f32 %v1210_v43, %v1209_v41 }
  0xf0   : > { %v1212_v46 = vpop.f32.mrf.mxu0 }
  0xf1   : > { %v610_v48 = vadd.f32 %v1211_v45, %v1097_v44 }
  0xf2   : > { %v1213_v49 = vpop.f32.mrf.mxu0 }
  0xf3   : > { %v1214_v50 = vadd.f32 %v1213_v49, %v1212_v46  ;;  %v675_v53 = vadd.f32 %v674_v42, %v610_v48  ;;  %v1132_v46 = vld [vmem:[%s1537_s7] ss:$0 sm:$0xff] }
  0xf4   : > { %v1215_v51 = vpop.f32.mrf.mxu0 }
  0xf5   : > { %v613_v54 = vadd.f32 %v1214_v50, %v1097_v44  ;;  %v705_v60 = vmax.f32 %v675_v53, 0.0  ;;  %v840_v50 = vadd.f32 %v1275_v37, %v1132_v46  ;;  %v832_v53 = vadd.f32 %v1132_v46, %v831_v38 }
  0xf6   : > { %v1216_v55 = vpop.f32.mrf.mxu0 }
  0xf7   : > { %v1217_v56 = vadd.f32 %v1216_v55, %v1215_v51  ;;  %v678_v57 = vadd.f32 %v677_v52, %v613_v54  ;;  %v843_v54 = vadd.f32 %v1276_v39, %v1132_v46 }
  0xf8   : > { %v1218_v58 = vpop.f32.mrf.mxu0 }
  0xf9   : > { %v618_v61 = vadd.f32 %v1217_v56, %v1097_v44  ;;  %v706_v62 = vmax.f32 %v678_v57, 0.0 }
  0xfa   : > { %v1219_v63 = vpop.f32.mrf.mxu0 }
  0xfb   : > { %v713_v0 = vpack.c.bf16 %v706_v62, %v705_v60  ;;  %v1220_v1 = vadd.f32 %v1219_v63, %v1218_v58  ;;  %v683_v4 = vadd.f32 %v1259_v40, %v618_v61  ;;  %v834_v40 = vpop.f32.mrf.mxu1 }
  0xfc   : > { %v1221_v2 = vpop.f32.mrf.mxu0  ;;  %v835_v58 = vadd.f32 %v1132_v46, %v834_v40 }
  0xfd   : > { %v621_v5 = vadd.f32 %v1220_v1, %v1097_v44  ;;  %1285 = vmatprep.mubr.msk.bf16.mxu1 %vm562_vm0, %v713_v0  ;;  %v707_v11 = vmax.f32 %v683_v4, 0.0  ;;  %v1279_v41 = vpop.f32.mrf.mxu1 }
  0xfe   : > { %v1222_v6 = vpop.f32.mrf.mxu0 }
  0xff   : > { %v686_v7 = vadd.f32 %v1260_v47, %v621_v5  ;;  %v1223_v8 = vadd.f32 %v1222_v6, %v1221_v2  ;;  %v847_v42 = vpop.f32.mrf.mxu1 }
 0x100   : > { %v1224_v9 = vpop.f32.mrf.mxu0 }
 0x101   : > { %v708_v12 = vmax.f32 %v686_v7, 0.0  ;;  %v626_v13 = vadd.f32 %v1223_v8, %v1097_v44  ;;  %v1280_v43 = vpop.f32.mrf.mxu1  ;;  %v856_v8 = vadd.f32 %v1279_v41, %v1132_v46 }
 0x102   : > { %v1225_v14 = vpop.f32.mrf.mxu0 }
 0x103   : > { %v714_v15 = vpack.c.bf16 %v708_v12, %v707_v11  ;;  %v1226_v16 = vadd.f32 %v1225_v14, %v1224_v9  ;;  %v691_v19 = vadd.f32 %v690_v3, %v626_v13  ;;  %v850_v45 = vpop.f32.mrf.mxu1  ;;  %v848_v11 = vadd.f32 %v1132_v46, %v847_v42 }
 0x104   : > { %v1227_v17 = vpop.f32.mrf.mxu0  ;;  %v859_v12 = vadd.f32 %v1280_v43, %v1132_v46 }
 0x105   : > { %1286 = vmatmul.mubr.msk.bf16.vlgmr.msra.gmra.mxu1 %vm562_vm0, %v714_v15  ;;  %v629_v20 = vadd.f32 %v1226_v16, %v1097_v44  ;;  %v709_v25 = vmax.f32 %v691_v19, 0.0  ;;  %v851_v16 = vadd.f32 %v1132_v46, %v850_v45 }
 0x106   : > { %v1228_v21 = vpop.f32.mrf.mxu0 }
 0x107   : > { %v1229_v22 = vadd.f32 %v1228_v21, %v1227_v17  ;;  %v694_v23 = vadd.f32 %v693_v18, %v629_v20 }
 0x108   : > { %v1230_v24 = vpop.f32.mrf.mxu0 }
 0x109   : > { %v634_v26 = vadd.f32 %v1229_v22, %v1097_v44  ;;  %v710_v27 = vmax.f32 %v694_v23, 0.0 }
 0x10a   : > { %v1231_v28 = vpop.f32.mrf.mxu0 }
 0x10b   : > { %v715_v29 = vpack.c.bf16 %v710_v27, %v709_v25  ;;  %v1232_v30 = vadd.f32 %v1231_v28, %v1230_v24  ;;  %v699_v31 = vadd.f32 %v1263_v59, %v634_v26 }
 0x10d   : > { %v637_v32 = vadd.f32 %v1232_v30, %v1097_v44  ;;  %1289 = vmatprep.mubr.msk.bf16.mxu1 %vm562_vm0, %v715_v29  ;;  %v711_v34 = vmax.f32 %v699_v31, 0.0  ;;  %v1145_v44 = vld [vmem:[%s1534_s4] ss:$0 sm:$0xff] }
 0x10f   : > { %v702_v33 = vadd.f32 %v1264_v10, %v637_v32 }
 0x111   : > { %v712_v35 = vmax.f32 %v702_v33, 0.0 }
 0x113   : > { %v716_v36 = vpack.c.bf16 %v712_v35, %v711_v34 }
 0x115   : > { %1290 = vmatmul.mubr.msk.bf16.gmra.mxu1 %vm562_vm0, %v716_v36 }
 0x1c5   : > { %v1287_v47 = vpop.f32.mrf.mxu1 }
 0x1c6   : > { %v940_v48 = vadd.f32 %v1287_v47, %v1145_v44 }
 0x1c7   : > { %v931_v49 = vpop.f32.mrf.mxu1 }
 0x1c8   : > { %v932_v51 = vadd.f32 %v1145_v44, %v931_v49  ;;  %v964_v55 = vadd.f32 %v940_v48, %v840_v50 }
 0x1c9   : > { %v1288_v52 = vpop.f32.mrf.mxu1 }
 0x1ca   : > { %v943_v56 = vadd.f32 %v1288_v52, %v1145_v44  ;;  %v962_v59 = vadd.f32 %v932_v51, %v832_v53  ;;  %v972_v62 = vmax.f32 %v964_v55, 0.0 }
 0x1cb   : > { %v934_v57 = vpop.f32.mrf.mxu1 }
 0x1cc   : > { %v965_v60 = vadd.f32 %v943_v56, %v843_v54  ;;  %v935_v61 = vadd.f32 %v1145_v44, %v934_v57  ;;  %v970_v1 = vmax.f32 %v962_v59, 0.0 }
 0x1ce   : > { %v973_v63 = vmax.f32 %v965_v60, 0.0  ;;  %v963_v0 = vadd.f32 %v935_v61, %v835_v58 }
 0x1d0   : > { %v1178_v2 = vpack.c.bf16 %v973_v63, %v972_v62  ;;  %v971_v3 = vmax.f32 %v963_v0, 0.0 }
 0x1d2   : > { %1190 = vst [vmem:[%s332_s12 + $0x8] sm:$0xff] %v1178_v2   ;;  %v1173_v4 = vpack.c.bf16 %v971_v3, %v970_v1 }
 0x1d4   : > { %1174 = vst [vmem:[%s332_s12] sm:$0xff] %v1173_v4  }
 0x1d5   : > { %v1291_v5 = vpop.f32.mrf.mxu1 }
 0x1d6   : > { %v956_v6 = vadd.f32 %v1291_v5, %v1145_v44 }
 0x1d7   : > { %v947_v7 = vpop.f32.mrf.mxu1 }
 0x1d8   : > { %v948_v9 = vadd.f32 %v1145_v44, %v947_v7  ;;  %v968_v13 = vadd.f32 %v956_v6, %v856_v8 }
 0x1d9   : > { %v1292_v10 = vpop.f32.mrf.mxu1 }
 0x1da   : > { %v959_v14 = vadd.f32 %v1292_v10, %v1145_v44  ;;  %v966_v17 = vadd.f32 %v948_v9, %v848_v11  ;;  %v976_v20 = vmax.f32 %v968_v13, 0.0 }
 0x1db   : > { %v950_v15 = vpop.f32.mrf.mxu1 }
 0x1dc   : > { %v969_v18 = vadd.f32 %v959_v14, %v859_v12  ;;  %v951_v19 = vadd.f32 %v1145_v44, %v950_v15  ;;  %v974_v23 = vmax.f32 %v966_v17, 0.0 }
 0x1de   : > { %v977_v21 = vmax.f32 %v969_v18, 0.0  ;;  %v967_v22 = vadd.f32 %v951_v19, %v851_v16 }
 0x1e0   : > { %v1188_v24 = vpack.c.bf16 %v977_v21, %v976_v20  ;;  %v975_v25 = vmax.f32 %v967_v22, 0.0 }
 0x1e2   : > { %1192 = vst [vmem:[%s332_s12 + $0x18] sm:$0xff] %v1188_v24   ;;  %v1183_v26 = vpack.c.bf16 %v975_v25, %v974_v23 }
 0x1e4   : > { %1191 = vst [vmem:[%s332_s12 + $0x10] sm:$0xff] %v1183_v26  }
 0x1e5 PF: > { %s18_s27 = sadd.s32 1, %s1352_s27  }
 0x1e6   : > { %p15_p4 = scmp.ge.s32.totalorder %s18_s27, 4  }
 0x1e8   :  { %17 = sbr.rel (!%p15_p4) target bundleno = 1 (0x1), region = 85 }

</bundles_post_ra>
